<compile_context>
chip_gen: v6e
topology: v6e:2x2x1
jax: 0.10.0
libtpu: 0.0.40
codegen_flags: <defaults>
</compile_context>

<pallas_src>
import jax
import jax.numpy as jnp
from jax import lax
from jax.experimental import pallas as pl
from jax.experimental.pallas import tpu as pltpu


def _round_up(x, m):
    return (x + m - 1) // m * m


def _vmem_capacity():
    try:
        return int(pltpu.get_tpu_info().vmem_capacity_bytes)
    except Exception:
        return 64 * 1024 * 1024


# --------------------------------------------------------------------------
# Tile selection: budget against the real per-step footprint, keep >=2 grid
# steps when there is enough work (v7x megacore), always 128-lane aligned.
# --------------------------------------------------------------------------
def _pick_tile(L, ns, cin_pad, hidden, cout, vmem):
    L128 = _round_up(L, 128)
    budget = vmem // 4                                # headroom for weights/pipeline
    per_lane = (2 * ns * cin_pad                      # x block (double-buffered)
                + ns * (hidden + cout)                # h / y intermediates
                + 2 * cout + 8) * 4                   # out block (double-buffered) + mask
    lt = max(128, min(2048, budget // per_lane // 128 * 128))
    lt = min(lt, L128)
    if L128 >= 256:                                   # >=2 grid steps for 2 TensorCores
        lt = min(lt, max(128, (L128 // 2) // 128 * 128))
    L_pad = _round_up(L, lt)
    return lt, L_pad


# --------------------------------------------------------------------------
# Pallas kernel: shared MLP (1x1 convs, BN folded) + ReLU + max-pool over nsample.
# Input lane layout (built in the wrapper):
#   global lane = tile*(ns*lt) + sample*lt + centroid_within_tile
# so each sample group inside a tile is one contiguous, 128-aligned lt-lane slice.
# --------------------------------------------------------------------------
def sa_mlp_maxpool(x, mask, w1t, b1c, w2t, b2c):
    """
    x:    (cin_pad, ns, L) f32  -- channel x sample x centroid (centroid = b*npoint + s)
    mask: (1, L) f32            -- (idx_cnt > 0) per centroid
    w1t:  (hidden, cin_pad) f32 -- BN scale folded in
    b1c:  (hidden, 1) f32       -- BN shift
    w2t:  (cout, hidden) f32
    b2c:  (cout, 1) f32
    returns (cout, L) f32
    """
    cin_pad, ns, L = x.shape
    hidden = w1t.shape[0]
    cout = w2t.shape[0]

    vmem = _vmem_capacity()
    lt, L_pad = _pick_tile(L, ns, cin_pad, hidden, cout, vmem)
    nt = L_pad // lt

    # Wrapper-side layout plumbing: pad L, fold nsample into lanes (sample-major,
    # centroid-minor inside each tile).
    xp = jnp.pad(x, ((0, 0), (0, 0), (0, L_pad - L)))
    xp = xp.reshape(cin_pad, ns, nt, lt).transpose(0, 2, 1, 3).reshape(cin_pad, nt * ns * lt)
    mp = jnp.pad(mask, ((0, 0), (0, L_pad - L)))

    def kernel(x_ref, m_ref, w1_ref, b1_ref, w2_ref, b2_ref, o_ref):
        xv = x_ref[...]                                              # (cin_pad, ns*lt) f32
        h = jnp.dot(w1_ref[...], xv, preferred_element_type=jnp.float32)
        h = jnp.maximum(h + b1_ref[...], 0.0)                        # folded-BN shift + ReLU
        y = jnp.dot(w2_ref[...], h, preferred_element_type=jnp.float32)
        y = jnp.maximum(y + b2_ref[...], 0.0)                        # (cout, ns*lt)
        # max-pool over nsample: ns-1 VPU maxima of contiguous lt-lane slices
        pooled = y[:, :lt]
        for n in range(1, ns):
            pooled = jnp.maximum(pooled, y[:, n * lt:(n + 1) * lt])
        o_ref[...] = pooled * m_ref[...]                             # (idx_cnt > 0) mask

    # per-step VMEM footprint -> same number feeds the tile picker budget above
    step_bytes = (2 * cin_pad * ns * lt * 4        # x block, double-buffered
                  + 2 * lt * 4                     # mask block
                  + 2 * cout * lt * 4              # output block
                  + ns * lt * (hidden + cout) * 4  # h / y intermediates
                  + 2 * (hidden * cin_pad + cout * hidden + hidden + cout) * 4)
    vmem_limit = int(min(vmem, max(32 * 1024 * 1024, 2 * step_bytes)))

    flops = 2 * L_pad * ns * (cin_pad * hidden + hidden * cout)
    bytes_accessed = (xp.size + mp.size + w1t.size + w2t.size + b1c.size + b2c.size
                      + cout * L_pad) * 4

    # TODO(synk): on 128 MiB-VMEM parts (v5e/v6e) the x input could use
    # pipeline_mode=pl.Buffered(3) if the DMA becomes exposed; left at the default
    # depth so the same footprint math holds on v7x's 64 MiB per-TC VMEM.
    pooled = pl.pallas_call(
        kernel,
        out_shape=jax.ShapeDtypeStruct((cout, L_pad), jnp.float32),
        grid_spec=pltpu.PrefetchScalarGridSpec(
            num_scalar_prefetch=0,
            grid=(nt,),
            in_specs=[
                pl.BlockSpec((cin_pad, ns * lt), lambda i: (0, i)),
                pl.BlockSpec((1, lt),            lambda i: (0, i)),
                pl.BlockSpec(w1t.shape,          lambda i: (0, 0)),
                pl.BlockSpec(b1c.shape,          lambda i: (0, 0)),
                pl.BlockSpec(w2t.shape,          lambda i: (0, 0)),
                pl.BlockSpec(b2c.shape,          lambda i: (0, 0)),
            ],
            out_specs=pl.BlockSpec((cout, lt), lambda i: (0, i)),
        ),
        compiler_params=pltpu.CompilerParams(
            dimension_semantics=("parallel",),
            vmem_limit_bytes=vmem_limit),
        cost_estimate=pl.CostEstimate(
            flops=int(flops), transcendentals=0, bytes_accessed=int(bytes_accessed)),
    )(xp, mp, w1t, b1c, w2t, b2c)

    return pooled[:, :L]


# --------------------------------------------------------------------------
# Plain-JAX glue: d-FPS, ball query, grouping (data-dependent gathers).
# --------------------------------------------------------------------------
def furthest_point_sample(xyz, npoint):
    """d-fps, matches the CUDA kernel (starts at index 0). xyz: (B,N,3) -> (B,npoint) int32"""
    B, N, _ = xyz.shape

    def body(i, state):
        idxs, dists, farthest = state
        idxs = idxs.at[:, i].set(farthest)
        centroid = xyz[jnp.arange(B), farthest]                  # (B,3)
        d = jnp.sum((xyz - centroid[:, None, :]) ** 2, axis=-1)  # (B,N)
        dists = jnp.minimum(dists, d)
        farthest = jnp.argmax(dists, axis=-1).astype(jnp.int32)
        return idxs, dists, farthest

    idxs = jnp.zeros((B, npoint), jnp.int32)
    dists = jnp.full((B, N), 1e10, jnp.float32)
    farthest = jnp.zeros((B,), jnp.int32)
    idxs, _, _ = lax.fori_loop(0, npoint, body, (idxs, dists, farthest))
    return idxs


def ball_query(radius, nsample, xyz, new_xyz):
    """Returns (idx_cnt (B,S) int32, idx (B,S,nsample) int32). First-nsample-in-order
    semantics with empty slots filled by the first hit (0 when no hit), as in CUDA.
    Uses lax.top_k instead of a full sort over N."""
    B, N, _ = xyz.shape
    d2 = jnp.sum((new_xyz[:, :, None, :] - xyz[:, None, :, :]) ** 2, axis=-1)  # (B,S,N)
    within = d2 < (radius ** 2)
    key = jnp.where(within, jnp.arange(N, dtype=jnp.int32)[None, None, :], N)
    neg_vals, _ = lax.top_k(-key, nsample)                                     # (B,S,ns)
    sorted_idx = -neg_vals                                                     # ascending
    first = sorted_idx[..., :1]
    idx = jnp.where(sorted_idx == N, first, sorted_idx)
    idx = jnp.where(idx == N, 0, idx).astype(jnp.int32)
    idx_cnt = jnp.minimum(jnp.sum(within, axis=-1), nsample).astype(jnp.int32)
    return idx_cnt, idx


def pointnet_sa_module_fs_forward(xyz, features, radius, nsample, npoint,
                                  w1, s1, b1, w2, s2, b2):
    """
    xyz:      (B, N, 3)
    features: (B, C, N)
    returns   new_xyz (B, npoint, 3), new_features (B, C_out, npoint), None
    """
    B, N, _ = xyz.shape
    S = npoint

    # sampling (d-fps over full range) + gather of new_xyz
    sample_idx = furthest_point_sample(xyz, npoint)                      # (B,S)
    new_xyz = xyz[jnp.arange(B)[:, None], sample_idx]                    # (B,S,3)

    # grouper: ball query + QueryAndGroup(use_xyz=True)
    idx_cnt, idx = ball_query(radius, nsample, xyz, new_xyz)
    bi = jnp.arange(B)[:, None, None]
    grouped_xyz = xyz[bi, idx] - new_xyz[:, :, None, :]                  # (B,S,ns,3)
    feats_t = jnp.transpose(features, (0, 2, 1))                         # (B,N,C)
    grouped_feats = feats_t[bi, idx]                                     # (B,S,ns,C)
    grouped = jnp.concatenate([grouped_xyz, grouped_feats], axis=-1)     # (B,S,ns,3+C)
    # TODO(synk): fuse this ball-query gather + layout transpose into the Pallas kernel
    # (scalar-prefetched idx + manual DMA gather from HBM via memory_space=pl.ANY) to
    # remove the HBM round-trip of the grouped tensor at production sizes.

    # pad channels to a sublane multiple (f32 -> 8)
    cin = grouped.shape[-1]
    cin_pad = _round_up(cin, 8)
    if cin_pad != cin:
        grouped = jnp.pad(grouped, ((0, 0), (0, 0), (0, 0), (0, cin_pad - cin)))
        w1 = jnp.pad(w1, ((0, cin_pad - cin), (0, 0)))

    # fold eval-mode BN scale into the conv weights; keep the shift as a bias (all f32)
    w1t = (w1 * s1).T.astype(jnp.float32)           # (hidden, cin_pad)
    w2t = (w2 * s2).T.astype(jnp.float32)           # (cout, hidden)
    b1c = b1.reshape(-1, 1).astype(jnp.float32)     # (hidden, 1)
    b2c = b2.reshape(-1, 1).astype(jnp.float32)     # (cout, 1)

    # lane-dense layout: channels on sublanes, centroids on lanes, nsample folded
    # into lanes inside the Pallas wrapper.
    L = B * S
    x = jnp.transpose(grouped, (3, 2, 0, 1)).reshape(cin_pad, nsample, L).astype(jnp.float32)
    mask = (idx_cnt > 0).astype(jnp.float32).reshape(1, L)

    pooled = sa_mlp_maxpool(x, mask, w1t, b1c, w2t, b2c)                 # (cout, L)
    cout = w2.shape[1]
    new_features = jnp.transpose(pooled.reshape(cout, B, S), (1, 0, 2))  # (B,cout,S)
    return new_xyz, new_features, None
    # TODO(synk): aggregation_mlp / confidence_mlp / skip_connection / f-fps / s-fps /
    # hvcs_v2 / PSNet / avg_pool branches are None/off in the base-module config.


# pure-JAX f32 reference for the Pallas part (mask before pool, like the PyTorch module)
def _ref_mlp_pool(grouped, idx_cnt, w1, s1, b1, w2, s2, b2):
    h = jnp.einsum('bsnc,ch->bsnh', grouped, w1 * s1) + b1[0]
    h = jnp.maximum(h, 0.0)
    y = jnp.einsum('bsnh,ho->bsno', h, w2 * s2) + b2[0]
    y = jnp.maximum(y, 0.0)
    mask = (idx_cnt > 0).astype(jnp.float32)[..., None, None]
    return jnp.max(y * mask, axis=2)                                     # (B,S,cout)


if __name__ == "__main__":
    key = jax.random.PRNGKey(0)
    B, N, C = 2, 64, 4
    npoint, nsample, radius = 16, 16, 0.4
    c_in3, hidden, c_out = C + 3, 16, 32

    k1, k2, k3, k4, k5 = jax.random.split(key, 5)
    xyz = jax.random.uniform(k1, (B, N, 3), jnp.float32)
    features = jax.random.normal(k2, (B, C, N), jnp.float32)

    # Conv2d(in,out,1,bias=False) weights stored as (in,out) matmul matrices,
    # eval-mode BatchNorm folded into per-channel scale/shift.
    w1 = (0.3 * jax.random.normal(k3, (c_in3, hidden))).astype(jnp.float32)
    w2 = (0.3 * jax.random.normal(k4, (hidden, c_out))).astype(jnp.float32)

    def bn_fold(keys, ch):
        g = 1.0 + 0.1 * jax.random.normal(keys[0], (ch,))
        beta = 0.1 * jax.random.normal(keys[1], (ch,))
        mean = 0.1 * jax.random.normal(keys[2], (ch,))
        var = jnp.abs(1.0 + 0.1 * jax.random.normal(keys[3], (ch,)))
        scale = g / jnp.sqrt(var + 1e-5)
        shift = beta - mean * scale
        return (scale[None, :].astype(jnp.float32),
                shift[None, :].astype(jnp.float32))

    bn_keys = jax.random.split(k5, 8)
    s1, b1 = bn_fold(bn_keys[:4], hidden)
    s2, b2 = bn_fold(bn_keys[4:], c_out)

    new_xyz, new_features, new_scores = pointnet_sa_module_fs_forward(
        xyz, features, radius, nsample, npoint, w1, s1, b1, w2, s2, b2)
    jax.block_until_ready(new_features)

    assert new_xyz.shape == (B, npoint, 3)
    assert new_features.shape == (B, c_out, npoint)
    assert new_scores is None

    # verify the Pallas hot path against a pure-JAX f32 reference
    sample_idx = furthest_point_sample(xyz, npoint)
    nxyz = xyz[jnp.arange(B)[:, None], sample_idx]
    idx_cnt, idx = ball_query(radius, nsample, xyz, nxyz)
    bi = jnp.arange(B)[:, None, None]
    grouped = jnp.concatenate(
        [xyz[bi, idx] - nxyz[:, :, None, :],
         jnp.transpose(features, (0, 2, 1))[bi, idx]], axis=-1)
    ref = jnp.transpose(_ref_mlp_pool(grouped, idx_cnt, w1, s1, b1, w2, s2, b2),
                        (0, 2, 1))
    assert jnp.allclose(new_features, ref, atol=2e-3, rtol=2e-3)

    print("KERNEL_OK")
</pallas_src>

<mosaic_0001>
module attributes {stable_mosaic.version = 11 : i64} {
  func.func @kernel(%arg0: i32, %arg1: memref<8x2048xf32, #tpu.memory_space<vmem>>, %arg2: memref<1x128xf32, #tpu.memory_space<vmem>>, %arg3: memref<16x8xf32, #tpu.memory_space<vmem>>, %arg4: memref<16x1xf32, #tpu.memory_space<vmem>>, %arg5: memref<32x16xf32, #tpu.memory_space<vmem>>, %arg6: memref<32x1xf32, #tpu.memory_space<vmem>>, %arg7: memref<32x128xf32, #tpu.memory_space<vmem>>) attributes {dimension_semantics = [#tpu.dimension_semantics<parallel>], iteration_bounds = array<i64: 1>, scalar_prefetch = 0 : i64, scratch_operands = 0 : i64, tpu.core_type = #tpu.core_type<tc>, window_params = [{transform_indices = @transform_0, window_bounds = array<i64: 8, 2048>}, {transform_indices = @transform_1, window_bounds = array<i64: 1, 128>}, {pipeline_mode = #tpu.pipeline_mode<synchronous>, transform_indices = @transform_2, window_bounds = array<i64: 16, 8>}, {pipeline_mode = #tpu.pipeline_mode<synchronous>, transform_indices = @transform_3, window_bounds = array<i64: 16, 1>}, {pipeline_mode = #tpu.pipeline_mode<synchronous>, transform_indices = @transform_4, window_bounds = array<i64: 32, 16>}, {pipeline_mode = #tpu.pipeline_mode<synchronous>, transform_indices = @transform_5, window_bounds = array<i64: 32, 1>}, {transform_indices = @transform_6, window_bounds = array<i64: 32, 128>}]} {
    %c0 = arith.constant 0 : index
    %c0_0 = arith.constant 0 : index
    %0 = vector.load %arg1[%c0, %c0_0] : memref<8x2048xf32, #tpu.memory_space<vmem>>, vector<8x2048xf32>
    %c0_1 = arith.constant 0 : index
    %c0_2 = arith.constant 0 : index
    %1 = vector.load %arg3[%c0_1, %c0_2] : memref<16x8xf32, #tpu.memory_space<vmem>>, vector<16x8xf32>
    %cst = arith.constant dense<0.000000e+00> : vector<16x2048xf32>
    %2 = tpu.matmul %1, %0, %cst {dimension_numbers = #tpu.dot_dimension_numbers<[1], [0], [0], [1], [0, 0, 1, 1], [], []>} : vector<16x8xf32>, vector<8x2048xf32>, vector<16x2048xf32> -> vector<16x2048xf32>
    %c0_3 = arith.constant 0 : index
    %c0_4 = arith.constant 0 : index
    %3 = vector.load %arg4[%c0_3, %c0_4] : memref<16x1xf32, #tpu.memory_space<vmem>>, vector<16x1xf32>
    %4 = vector.broadcast %3 : vector<16x1xf32> to vector<16x2048xf32>
    %5 = arith.addf %2, %4 : vector<16x2048xf32>
    %cst_5 = arith.constant 0.000000e+00 : f32
    %6 = vector.broadcast %cst_5 : f32 to vector<16x2048xf32>
    %7 = arith.maximumf %5, %6 : vector<16x2048xf32>
    %c0_6 = arith.constant 0 : index
    %c0_7 = arith.constant 0 : index
    %8 = vector.load %arg5[%c0_6, %c0_7] : memref<32x16xf32, #tpu.memory_space<vmem>>, vector<32x16xf32>
    %cst_8 = arith.constant dense<0.000000e+00> : vector<32x2048xf32>
    %9 = tpu.matmul %8, %7, %cst_8 {dimension_numbers = #tpu.dot_dimension_numbers<[1], [0], [0], [1], [0, 0, 1, 1], [], []>} : vector<32x16xf32>, vector<16x2048xf32>, vector<32x2048xf32> -> vector<32x2048xf32>
    %c0_9 = arith.constant 0 : index
    %c0_10 = arith.constant 0 : index
    %10 = vector.load %arg6[%c0_9, %c0_10] : memref<32x1xf32, #tpu.memory_space<vmem>>, vector<32x1xf32>
    %11 = vector.broadcast %10 : vector<32x1xf32> to vector<32x2048xf32>
    %12 = arith.addf %9, %11 : vector<32x2048xf32>
    %cst_11 = arith.constant 0.000000e+00 : f32
    %13 = vector.broadcast %cst_11 : f32 to vector<32x2048xf32>
    %14 = arith.maximumf %12, %13 : vector<32x2048xf32>
    %15 = vector.extract_strided_slice %14 {offsets = [0, 0], sizes = [32, 128], strides = [1, 1]} : vector<32x2048xf32> to vector<32x128xf32>
    %16 = vector.extract_strided_slice %14 {offsets = [0, 128], sizes = [32, 128], strides = [1, 1]} : vector<32x2048xf32> to vector<32x128xf32>
    %17 = arith.maximumf %15, %16 : vector<32x128xf32>
    %18 = vector.extract_strided_slice %14 {offsets = [0, 256], sizes = [32, 128], strides = [1, 1]} : vector<32x2048xf32> to vector<32x128xf32>
    %19 = arith.maximumf %17, %18 : vector<32x128xf32>
    %20 = vector.extract_strided_slice %14 {offsets = [0, 384], sizes = [32, 128], strides = [1, 1]} : vector<32x2048xf32> to vector<32x128xf32>
    %21 = arith.maximumf %19, %20 : vector<32x128xf32>
    %22 = vector.extract_strided_slice %14 {offsets = [0, 512], sizes = [32, 128], strides = [1, 1]} : vector<32x2048xf32> to vector<32x128xf32>
    %23 = arith.maximumf %21, %22 : vector<32x128xf32>
    %24 = vector.extract_strided_slice %14 {offsets = [0, 640], sizes = [32, 128], strides = [1, 1]} : vector<32x2048xf32> to vector<32x128xf32>
    %25 = arith.maximumf %23, %24 : vector<32x128xf32>
    %26 = vector.extract_strided_slice %14 {offsets = [0, 768], sizes = [32, 128], strides = [1, 1]} : vector<32x2048xf32> to vector<32x128xf32>
    %27 = arith.maximumf %25, %26 : vector<32x128xf32>
    %28 = vector.extract_strided_slice %14 {offsets = [0, 896], sizes = [32, 128], strides = [1, 1]} : vector<32x2048xf32> to vector<32x128xf32>
    %29 = arith.maximumf %27, %28 : vector<32x128xf32>
    %30 = vector.extract_strided_slice %14 {offsets = [0, 1024], sizes = [32, 128], strides = [1, 1]} : vector<32x2048xf32> to vector<32x128xf32>
    %31 = arith.maximumf %29, %30 : vector<32x128xf32>
    %32 = vector.extract_strided_slice %14 {offsets = [0, 1152], sizes = [32, 128], strides = [1, 1]} : vector<32x2048xf32> to vector<32x128xf32>
    %33 = arith.maximumf %31, %32 : vector<32x128xf32>
    %34 = vector.extract_strided_slice %14 {offsets = [0, 1280], sizes = [32, 128], strides = [1, 1]} : vector<32x2048xf32> to vector<32x128xf32>
    %35 = arith.maximumf %33, %34 : vector<32x128xf32>
    %36 = vector.extract_strided_slice %14 {offsets = [0, 1408], sizes = [32, 128], strides = [1, 1]} : vector<32x2048xf32> to vector<32x128xf32>
    %37 = arith.maximumf %35, %36 : vector<32x128xf32>
    %38 = vector.extract_strided_slice %14 {offsets = [0, 1536], sizes = [32, 128], strides = [1, 1]} : vector<32x2048xf32> to vector<32x128xf32>
    %39 = arith.maximumf %37, %38 : vector<32x128xf32>
    %40 = vector.extract_strided_slice %14 {offsets = [0, 1664], sizes = [32, 128], strides = [1, 1]} : vector<32x2048xf32> to vector<32x128xf32>
    %41 = arith.maximumf %39, %40 : vector<32x128xf32>
    %42 = vector.extract_strided_slice %14 {offsets = [0, 1792], sizes = [32, 128], strides = [1, 1]} : vector<32x2048xf32> to vector<32x128xf32>
    %43 = arith.maximumf %41, %42 : vector<32x128xf32>
    %44 = vector.extract_strided_slice %14 {offsets = [0, 1920], sizes = [32, 128], strides = [1, 1]} : vector<32x2048xf32> to vector<32x128xf32>
    %45 = arith.maximumf %43, %44 : vector<32x128xf32>
    %c0_12 = arith.constant 0 : index
    %c0_13 = arith.constant 0 : index
    %46 = vector.load %arg2[%c0_12, %c0_13] : memref<1x128xf32, #tpu.memory_space<vmem>>, vector<1x128xf32>
    %47 = vector.broadcast %46 : vector<1x128xf32> to vector<32x128xf32>
    %48 = arith.mulf %45, %47 : vector<32x128xf32>
    %c0_14 = arith.constant 0 : index
    %c0_15 = arith.constant 0 : index
    %49 = vector.load %arg7[%c0_14, %c0_15] : memref<32x128xf32, #tpu.memory_space<vmem>>, vector<32x128xf32>
    tpu.vector_store %arg7[%c0_14, %c0_15], %48 {strides = array<i32>} : memref<32x128xf32, #tpu.memory_space<vmem>>, vector<32x128xf32>,
    return
  }
  func.func @transform_0(%arg0: i32) -> (i32, i32) {
    %c0_i32 = arith.constant 0 : i32
    %c0_i32_0 = arith.constant 0 : i32
    return %c0_i32, %arg0 : i32, i32
  }
  func.func @transform_1(%arg0: i32) -> (i32, i32) {
    %c0_i32 = arith.constant 0 : i32
    %c0_i32_0 = arith.constant 0 : i32
    return %c0_i32, %arg0 : i32, i32
  }
  func.func @transform_2(%arg0: i32) -> (i32, i32) {
    %c0_i32 = arith.constant 0 : i32
    %c0_i32_0 = arith.constant 0 : i32
    %c0_i32_1 = arith.constant 0 : i32
    return %c0_i32, %c0_i32_0 : i32, i32
  }
  func.func @transform_3(%arg0: i32) -> (i32, i32) {
    %c0_i32 = arith.constant 0 : i32
    %c0_i32_0 = arith.constant 0 : i32
    %c0_i32_1 = arith.constant 0 : i32
    return %c0_i32, %c0_i32_0 : i32, i32
  }
  func.func @transform_4(%arg0: i32) -> (i32, i32) {
    %c0_i32 = arith.constant 0 : i32
    %c0_i32_0 = arith.constant 0 : i32
    %c0_i32_1 = arith.constant 0 : i32
    return %c0_i32, %c0_i32_0 : i32, i32
  }
  func.func @transform_5(%arg0: i32) -> (i32, i32) {
    %c0_i32 = arith.constant 0 : i32
    %c0_i32_0 = arith.constant 0 : i32
    %c0_i32_1 = arith.constant 0 : i32
    return %c0_i32, %c0_i32_0 : i32, i32
  }
  func.func @transform_6(%arg0: i32) -> (i32, i32) {
    %c0_i32 = arith.constant 0 : i32
    %c0_i32_0 = arith.constant 0 : i32
    return %c0_i32, %arg0 : i32, i32
  }
}

</mosaic_0001>

<bundles_post_ra>
// kernel: tpu_custom_call.1
= control target key start
LH: loop header
LB: loop body
LE: loop exit
PB: predicated region body
PF: predicated region fallthrough
CT: control target
= control target key end

     0   :  { %11 = vsyncpa [#allocation3], 0  ;;  %s2070_s0 = inlined_call_operand.hbm [shape: f32[8,2048], index: 0, kind: input, shape index: {}]   ;;  %s2071_s1 = inlined_call_operand.vmem [shape: f32[1,128], index: 1, kind: input, shape index: {}]   ;;  %s2072_s2 = inlined_call_operand.vmem [shape: f32[16,8], index: 2, kind: input, shape index: {}]   ;;  %s2073_s3 = inlined_call_operand.vmem [shape: f32[16,1], index: 3, kind: input, shape index: {}]   ;;  %s2074_s4 = inlined_call_operand.vmem [shape: f32[32,16], index: 4, kind: input, shape index: {}]   ;;  %s2075_s5 = inlined_call_operand.vmem [shape: f32[32,1], index: 5, kind: input, shape index: {}]   ;;  %s2076_s6 = inlined_call_operand.hbm [shape: f32[32,128], index: 6, kind: output, shape index: {}]  }
   0x1   :  { %12 = vsyncpa [#allocation4], 0  ;;  %s1731_s21 = smov [#allocation2]  }
   0x2   :  { %s19_s22 = sshll.u32 %s1731_s21, 4  ;;  %s20_s22 = int_to_ptr.vmem [resolvable:$true] %s19_s22 }
   0x3   :  { %s1695_s23 = scalar_lea.vmem %s20_s22, 2048  ;;  %p1700_p1 = scmp.lt.s32.totalorder %s20_s22, %s20_s22 }
   0x4   :  { %p1696_p0 = scmp.ne.s32.totalorder %s20_s22, %s1695_s23  ;;  %p1701_p2 = scmp.lt.s32.totalorder %s1695_s23, %s1695_s23 }
   0x6   :  { %p1702_p3 = por %p1701_p2, %p1700_p1 }
   0x8   :  { %p1703_p4 = pnand %p1702_p3, %p1696_p0 }
   0xa   :  { %1706 = shalt.err (!%p1703_p4)
}
   0xb   :  { %22 = dma.hbm_to_vmem [thread:$0]  %s2070_s0, 2048, %s20_s22, [#allocation3]  }
   0xc   :  { %1727 = dma.done.wait [#allocation3], 2048  }
   0xd   :  { %1728 = vsyncadd [#allocation3], 4294965248  ;;  %v1732_v0 = vmov 0.0   ;;  %v1733_v1 = vmov 0   ;;  %v37_v2 = vld [vmem:[#allocation2 + $0x8] sm:$0xff]  ;;  %v39_v3 = vld [vmem:[#allocation2 + $0x18] sm:$0xff] }
   0xe   :  { %137 = vmatprep.mubr.f32.mxu0 %v1732_v0  ;;  %214 = vmatprep.mubr.f32.mxu1 %v1732_v0  ;;  %v36_v4 = vld [vmem:[#allocation2] sm:$0xff]  ;;  %vm66_vm0 = vcmask 64512   ;;  %v38_v5 = vld [vmem:[#allocation2 + $0x10] sm:$0xff]  ;;  %v41_v7 = vld [vmem:[#allocation2 + $0x28] sm:$0xff]  ;;  %vm749_vm1 = vcmask 130048  }
   0xf   :  { %1685 = vset.pattern.permute.xlu0 %v1733_v1  ;;  %1686 = vset.pattern.permute.xlu1 %v1733_v1  ;;  %v52_v6 = vld [vmem:[%s2072_s2] sm:$0xff]  ;;  %v43_v8 = vld [vmem:[#allocation2 + $0x38] sm:$0xff]  ;;  %v42_v10 = vld [vmem:[#allocation2 + $0x30] sm:$0xff] }
  0x10   :  { %103 = vmatprep.subr.mxu0 %v37_v2  ;;  %180 = vmatprep.subr.mxu1 %v39_v3  ;;  %v40_v9 = vld [vmem:[#allocation2 + $0x20] sm:$0xff]  ;;  %v53_v11 = vld [vmem:[%s2072_s2 + $0x8] sm:$0xff]  ;;  %v47_v13 = vld [vmem:[#allocation2 + $0x58] sm:$0xff] }
  0x11   :  { %104 = vmatpush1.msra.mxu0 %v36_v4  ;;  %181 = vmatpush1.msra.mxu1 %v38_v5  ;;  %v45_v12 = vld [vmem:[#allocation2 + $0x48] sm:$0xff]  ;;  %v44_v15 = vld [vmem:[#allocation2 + $0x40] sm:$0xff]  ;;  %v46_v16 = vld [vmem:[#allocation2 + $0x50] sm:$0xff] }
  0x12   :  { %1630 = vmatmul.mubr.msk.f32.vlgmr.msra.gmra.mxu0 %vm66_vm0, %v52_v6  ;;  %1632 = vmatmul.mubr.msk.f32.vlgmr.msra.gmra.mxu1 %vm66_vm0, %v52_v6  ;;  %v55_v14 = vld [vmem:[%s2073_s3 + $0x8] sm:$0xff]  ;;  %v51_v18 = vld [vmem:[#allocation2 + $0x78] sm:$0xff]  ;;  %v54_v19 = vld [vmem:[%s2073_s3] sm:$0xff] }
  0x13   :  { %143 = vmatprep.mubr.f32.mxu0 %v1732_v0  ;;  %220 = vmatprep.mubr.f32.mxu1 %v1732_v0  ;;  %v49_v17 = vld [vmem:[#allocation2 + $0x68] sm:$0xff]  ;;  %v48_v20 = vld [vmem:[#allocation2 + $0x60] sm:$0xff]  ;;  %v50_v21 = vld [vmem:[#allocation2 + $0x70] sm:$0xff] }
  0x14   :  { %257 = vmatprep.subr.mxu0 %v41_v7  ;;  %334 = vmatprep.subr.mxu1 %v43_v8  ;;  %v727_v22 = vld [vmem:[%s2075_s5 + $0x10] sm:$0xff]  ;;  %v725_v23 = vld [vmem:[%s2075_s5] sm:$0xff]  ;;  %v726_v24 = vld [vmem:[%s2075_s5 + $0x8] sm:$0xff] }
  0x15   :  { %258 = vmatpush1.msra.mxu0 %v40_v9  ;;  %335 = vmatpush1.msra.mxu1 %v42_v10  ;;  %v728_v25 = vld [vmem:[%s2075_s5 + $0x18] sm:$0xff]  ;;  %v1848_v58 = vld [vmem:[%s2074_s4] sm:$0xff] }
  0x16   :  { %1631 = vmatmul.mubr.msk.f32.gmra.mxu0 %vm66_vm0, %v53_v11  ;;  %1633 = vmatmul.mubr.msk.f32.gmra.mxu1 %vm66_vm0, %v53_v11 }
  0x17   :  { %291 = vmatprep.mubr.f32.mxu0 %v1732_v0  ;;  %368 = vmatprep.mubr.f32.mxu1 %v1732_v0 }
  0x18   :  { %411 = vmatprep.subr.mxu0 %v45_v12  ;;  %488 = vmatprep.subr.mxu1 %v47_v13 }
  0x19   :  { %63 = vperm.xlu0 %1685, %v55_v14   ;;  %731 = vperm.xlu1 %1686, %v725_v23   ;;  %v1876_v23 = vld [vmem:[%s2074_s4 + $0x10] sm:$0xff] }
  0x1a   :  { %1634 = vmatmul.mubr.msk.f32.vlgmr.msra.gmra.mxu0 %vm66_vm0, %v52_v6  ;;  %1636 = vmatmul.mubr.msk.f32.vlgmr.msra.gmra.mxu1 %vm66_vm0, %v52_v6 }
  0x1b   :  { %297 = vmatprep.mubr.f32.mxu0 %v1732_v0  ;;  %374 = vmatprep.mubr.f32.mxu1 %v1732_v0 }
  0x1c   :  { %412 = vmatpush1.msra.mxu0 %v44_v15  ;;  %489 = vmatpush1.msra.mxu1 %v46_v16 }
  0x1d   :  { %565 = vmatprep.subr.mxu0 %v49_v17  ;;  %642 = vmatprep.subr.mxu1 %v51_v18 }
  0x1e   :  { %1635 = vmatmul.mubr.msk.f32.gmra.mxu0 %vm66_vm0, %v53_v11  ;;  %1637 = vmatmul.mubr.msk.f32.gmra.mxu1 %vm66_vm0, %v53_v11 }
  0x1f   :  { %445 = vmatprep.mubr.f32.mxu0 %v1732_v0  ;;  %522 = vmatprep.mubr.f32.mxu1 %v1732_v0 }
  0x20   :  { %58 = vperm.xlu0 %1685, %v54_v19   ;;  %736 = vperm.xlu1 %1686, %v726_v24  }
  0x22   :  { %1638 = vmatmul.mubr.msk.f32.vlgmr.msra.gmra.mxu0 %vm66_vm0, %v52_v6  ;;  %1640 = vmatmul.mubr.msk.f32.vlgmr.msra.gmra.mxu1 %vm66_vm0, %v52_v6 }
  0x23   :  { %451 = vmatprep.mubr.f32.mxu0 %v1732_v0  ;;  %528 = vmatprep.mubr.f32.mxu1 %v1732_v0 }
  0x24   :  { %566 = vmatpush1.msra.mxu0 %v48_v20  ;;  %643 = vmatpush1.msra.mxu1 %v50_v21 }
  0x25   :  { %741 = vperm.xlu0 %1685, %v727_v22   ;;  %746 = vperm.xlu1 %1686, %v728_v25  }
  0x26   :  { %1639 = vmatmul.mubr.msk.f32.gmra.mxu0 %vm66_vm0, %v53_v11  ;;  %1641 = vmatmul.mubr.msk.f32.gmra.mxu1 %vm66_vm0, %v53_v11 }
  0x27   :  { %599 = vmatprep.mubr.f32.mxu0 %v1732_v0  ;;  %676 = vmatprep.mubr.f32.mxu1 %v1732_v0 }
  0x2a   :  { %1642 = vmatmul.mubr.msk.f32.vlgmr.msra.gmra.mxu0 %vm66_vm0, %v52_v6  ;;  %1644 = vmatmul.mubr.msk.f32.vlgmr.msra.gmra.mxu1 %vm66_vm0, %v52_v6  ;;  %v1865_v6 = vld [vmem:[%s2074_s4 + $0x8] sm:$0xff] }
  0x2b   :  { %605 = vmatprep.mubr.f32.mxu0 %v1732_v0  ;;  %682 = vmatprep.mubr.f32.mxu1 %v1732_v0 }
  0x2e   :  { %1643 = vmatmul.mubr.msk.f32.gmra.mxu0 %vm66_vm0, %v53_v11  ;;  %1645 = vmatmul.mubr.msk.f32.gmra.mxu1 %vm66_vm0, %v53_v11 }
  0x2f   :  { %826 = vmatprep.mubr.f32.mxu0 %v1732_v0  ;;  %915 = vmatprep.mubr.f32.mxu1 %v1732_v0 }
  0x94   :  { %v1833_v26 = vpop.permute.xlu0 %63 }
  0x9b   :  { %v1835_v33 = vpop.permute.xlu0 %58 }
  0xd2   :  { %v139_v27 = vpop.f32.mrf.mxu0  ;;  %v216_v28 = vpop.f32.mrf.mxu1 }
  0xd3   :  { %v140_v42 = vadd.f32 %v139_v27, %v1835_v33  ;;  %v217_v43 = vadd.f32 %v216_v28, %v1835_v33 }
  0xd4   :  { %v141_v29 = vpop.f32.mrf.mxu0  ;;  %v218_v30 = vpop.f32.mrf.mxu1 }
  0xd5   :  { %v142_v38 = vadd.f32 %v141_v29, %v1835_v33  ;;  %v219_v39 = vadd.f32 %v218_v30, %v1835_v33  ;;  %v689_v54 = vmax.f32 %v140_v42, 0.0  ;;  %v691_v55 = vmax.f32 %v217_v43, 0.0 }
  0xd6   :  { %v145_v31 = vpop.f32.mrf.mxu0  ;;  %v222_v32 = vpop.f32.mrf.mxu1 }
  0xd7   :  { %v146_v34 = vadd.f32 %v145_v31, %v1833_v26  ;;  %v223_v35 = vadd.f32 %v222_v32, %v1833_v26  ;;  %v690_v52 = vmax.f32 %v142_v38, 0.0  ;;  %v692_v53 = vmax.f32 %v219_v39, 0.0 }
  0xd8   :  { %v147_v36 = vpop.f32.mrf.mxu0  ;;  %v224_v37 = vpop.f32.mrf.mxu1 }
  0xd9   :  { %v148_v40 = vadd.f32 %v147_v36, %v1833_v26  ;;  %v225_v41 = vadd.f32 %v224_v37, %v1833_v26  ;;  %v705_v48 = vmax.f32 %v146_v34, 0.0  ;;  %v707_v49 = vmax.f32 %v223_v35, 0.0  ;;  %v1895_v34 = vld [vmem:[%s2074_s4 + $0x18] sm:$0xff] }
  0xda   :  { %v293_v44 = vpop.f32.mrf.mxu0  ;;  %v370_v45 = vpop.f32.mrf.mxu1 }
  0xdb   :  { %v706_v46 = vmax.f32 %v148_v40, 0.0  ;;  %v708_v47 = vmax.f32 %v225_v41, 0.0  ;;  %v294_v9 = vadd.f32 %v293_v44, %v1835_v33  ;;  %v371_v10 = vadd.f32 %v370_v45, %v1835_v33 }
  0xdc   :  { %v295_v50 = vpop.f32.mrf.mxu0  ;;  %v372_v51 = vpop.f32.mrf.mxu1 }
  0xdd   :  { %790 = vmatprep.subr.mxu0 %v706_v46  ;;  %879 = vmatprep.subr.mxu1 %v708_v47  ;;  %v296_v2 = vadd.f32 %v295_v50, %v1835_v33  ;;  %v373_v3 = vadd.f32 %v372_v51, %v1835_v33  ;;  %v693_v19 = vmax.f32 %v294_v9, 0.0  ;;  %v695_v20 = vmax.f32 %v371_v10, 0.0 }
  0xde   :  { %v299_v56 = vpop.f32.mrf.mxu0  ;;  %v376_v57 = vpop.f32.mrf.mxu1  ;;  %791 = vmatpush1.msra.mxu0 %v705_v48  ;;  %880 = vmatpush1.msra.mxu1 %v707_v49 }
  0xdf   :  { %792 = vmatprep.subr.mxu0 %v690_v52  ;;  %881 = vmatprep.subr.mxu1 %v692_v53  ;;  %v300_v59 = vadd.f32 %v299_v56, %v1833_v26  ;;  %v377_v62 = vadd.f32 %v376_v57, %v1833_v26  ;;  %v694_v15 = vmax.f32 %v296_v2, 0.0  ;;  %v696_v16 = vmax.f32 %v373_v3, 0.0 }
  0xe0   :  { %v301_v60 = vpop.f32.mrf.mxu0  ;;  %v378_v61 = vpop.f32.mrf.mxu1  ;;  %793 = vmatpush1.msra.mxu0 %v689_v54  ;;  %882 = vmatpush1.msra.mxu1 %v691_v55 }
  0xe1   :  { %v302_v63 = vadd.f32 %v301_v60, %v1833_v26  ;;  %v379_v1 = vadd.f32 %v378_v61, %v1833_v26  ;;  %1646 = vmatmul.mubr.msk.f32.vlgmr.msra.gmra.mxu0 %vm749_vm1, %v1848_v58  ;;  %1650 = vmatmul.mubr.msk.f32.vlgmr.msra.gmra.mxu1 %vm749_vm1, %v1848_v58  ;;  %v709_v13 = vmax.f32 %v300_v59, 0.0  ;;  %v711_v14 = vmax.f32 %v377_v62, 0.0 }
  0xe2   :  { %v447_v4 = vpop.f32.mrf.mxu0  ;;  %v524_v5 = vpop.f32.mrf.mxu1  ;;  %832 = vmatprep.mubr.f32.mxu0 %v1732_v0  ;;  %921 = vmatprep.mubr.f32.mxu1 %v1732_v0 }
  0xe3   :  { %v710_v7 = vmax.f32 %v302_v63, 0.0  ;;  %v712_v8 = vmax.f32 %v379_v1, 0.0  ;;  %v448_v41 = vadd.f32 %v447_v4, %v1835_v33  ;;  %v525_v42 = vadd.f32 %v524_v5, %v1835_v33 }
  0xe4   :  { %v449_v11 = vpop.f32.mrf.mxu0  ;;  %v526_v12 = vpop.f32.mrf.mxu1 }
  0xe5   :  { %1647 = vmatmul.mubr.msk.f32.gmra.mxu0 %vm749_vm1, %v1865_v6  ;;  %1651 = vmatmul.mubr.msk.f32.gmra.mxu1 %vm749_vm1, %v1865_v6  ;;  %v450_v39 = vadd.f32 %v449_v11, %v1835_v33  ;;  %v527_v40 = vadd.f32 %v526_v12, %v1835_v33  ;;  %v697_v51 = vmax.f32 %v448_v41, 0.0  ;;  %v699_v52 = vmax.f32 %v525_v42, 0.0 }
  0xe6   :  { %968 = vmatprep.subr.mxu0 %v710_v7  ;;  %1057 = vmatprep.subr.mxu1 %v712_v8  ;;  %v453_v17 = vpop.f32.mrf.mxu0  ;;  %v530_v18 = vpop.f32.mrf.mxu1 }
  0xe7   :  { %969 = vmatpush1.msra.mxu0 %v709_v13  ;;  %1058 = vmatpush1.msra.mxu1 %v711_v14  ;;  %v454_v35 = vadd.f32 %v453_v17, %v1833_v26  ;;  %v531_v36 = vadd.f32 %v530_v18, %v1833_v26  ;;  %v698_v49 = vmax.f32 %v450_v39, 0.0  ;;  %v700_v50 = vmax.f32 %v527_v40, 0.0  ;;  %v1989_v8 = vpop.permute.xlu1 %731 }
  0xe8   :  { %970 = vmatprep.subr.mxu0 %v694_v15  ;;  %1059 = vmatprep.subr.mxu1 %v696_v16  ;;  %v455_v21 = vpop.f32.mrf.mxu0  ;;  %v532_v22 = vpop.f32.mrf.mxu1 }
  0xe9   :  { %v456_v24 = vadd.f32 %v455_v21, %v1833_v26  ;;  %v533_v25 = vadd.f32 %v532_v22, %v1833_v26  ;;  %838 = vmatprep.mubr.f32.mxu0 %v1732_v0  ;;  %927 = vmatprep.mubr.f32.mxu1 %v1732_v0  ;;  %v713_v47 = vmax.f32 %v454_v35, 0.0  ;;  %v715_v48 = vmax.f32 %v531_v36, 0.0 }
  0xea   :  { %971 = vmatpush1.msra.mxu0 %v693_v19  ;;  %1060 = vmatpush1.msra.mxu1 %v695_v20  ;;  %v1882_v27 = vpop.f32.mrf.mxu0  ;;  %v1884_v28 = vpop.f32.mrf.mxu1 }
  0xeb   :  { %v714_v29 = vmax.f32 %v456_v24, 0.0  ;;  %v716_v30 = vmax.f32 %v533_v25, 0.0  ;;  %1648 = vmatmul.mubr.msk.f32.gmra.mxu0 %vm749_vm1, %v1876_v23  ;;  %1652 = vmatmul.mubr.msk.f32.gmra.mxu1 %vm749_vm1, %v1876_v23  ;;  %v602_v60 = vadd.f32 %v1882_v27, %v1835_v33  ;;  %v679_v61 = vadd.f32 %v1884_v28, %v1835_v33  ;;  %v1992_v13 = vpop.permute.xlu1 %736  ;;  %v2000_v27 = vpop.permute.xlu0 %741 }
  0xec   :  { %v603_v31 = vpop.f32.mrf.mxu0  ;;  %v680_v32 = vpop.f32.mrf.mxu1  ;;  %844 = vmatprep.mubr.f32.mxu0 %v1732_v0  ;;  %933 = vmatprep.mubr.f32.mxu1 %v1732_v0 }
  0xed   :  { %1146 = vmatprep.subr.mxu0 %v714_v29  ;;  %1235 = vmatprep.subr.mxu1 %v716_v30  ;;  %v604_v57 = vadd.f32 %v603_v31, %v1835_v33  ;;  %v681_v59 = vadd.f32 %v680_v32, %v1835_v33  ;;  %v701_v2 = vmax.f32 %v602_v60, 0.0  ;;  %v703_v3 = vmax.f32 %v679_v61, 0.0 }
  0xee   :  { %v607_v37 = vpop.f32.mrf.mxu0  ;;  %v684_v38 = vpop.f32.mrf.mxu1 }
  0xef   :  { %1649 = vmatmul.mubr.msk.f32.gmra.mxu0 %vm749_vm1, %v1895_v34  ;;  %1653 = vmatmul.mubr.msk.f32.gmra.mxu1 %vm749_vm1, %v1895_v34  ;;  %v608_v55 = vadd.f32 %v607_v37, %v1833_v26  ;;  %v685_v56 = vadd.f32 %v684_v38, %v1833_v26  ;;  %v702_v63 = vmax.f32 %v604_v57, 0.0  ;;  %v704_v1 = vmax.f32 %v681_v59, 0.0 }
  0xf0   :  { %v609_v43 = vpop.f32.mrf.mxu0  ;;  %v686_v44 = vpop.f32.mrf.mxu1  ;;  %1004 = vmatprep.mubr.f32.mxu0 %v1732_v0  ;;  %1093 = vmatprep.mubr.f32.mxu1 %v1732_v0 }
  0xf1   :  { %v610_v45 = vadd.f32 %v609_v43, %v1833_v26  ;;  %v687_v46 = vadd.f32 %v686_v44, %v1833_v26  ;;  %v717_v26 = vmax.f32 %v608_v55, 0.0  ;;  %v719_v62 = vmax.f32 %v685_v56, 0.0  ;;  %v2007_v43 = vpop.permute.xlu1 %746 }
  0xf3   :  { %1654 = vmatmul.mubr.msk.f32.vlgmr.msra.gmra.mxu0 %vm749_vm1, %v1848_v58  ;;  %1658 = vmatmul.mubr.msk.f32.vlgmr.msra.gmra.mxu1 %vm749_vm1, %v1848_v58  ;;  %v718_v53 = vmax.f32 %v610_v45, 0.0  ;;  %v720_v54 = vmax.f32 %v687_v46, 0.0 }
  0xf4   :  { %1147 = vmatpush1.msra.mxu0 %v713_v47  ;;  %1236 = vmatpush1.msra.mxu1 %v715_v48 }
  0xf5   :  { %1148 = vmatprep.subr.mxu0 %v698_v49  ;;  %1237 = vmatprep.subr.mxu1 %v700_v50 }
  0xf6   :  { %1149 = vmatpush1.msra.mxu0 %v697_v51  ;;  %1238 = vmatpush1.msra.mxu1 %v699_v52 }
  0xf7   :  { %1010 = vmatprep.mubr.f32.mxu0 %v1732_v0  ;;  %1099 = vmatprep.mubr.f32.mxu1 %v1732_v0 }
  0xf8   :  { %1655 = vmatmul.mubr.msk.f32.gmra.mxu0 %vm749_vm1, %v1865_v6  ;;  %1659 = vmatmul.mubr.msk.f32.gmra.mxu1 %vm749_vm1, %v1865_v6 }
  0xf9   :  { %1324 = vmatprep.subr.mxu0 %v718_v53  ;;  %1413 = vmatprep.subr.mxu1 %v720_v54 }
  0xfa   :  { %1016 = vmatprep.mubr.f32.mxu0 %v1732_v0  ;;  %1105 = vmatprep.mubr.f32.mxu1 %v1732_v0 }
  0xfc   :  { %1656 = vmatmul.mubr.msk.f32.gmra.mxu0 %vm749_vm1, %v1876_v23  ;;  %1660 = vmatmul.mubr.msk.f32.gmra.mxu1 %vm749_vm1, %v1876_v23 }
  0xfd   :  { %1022 = vmatprep.mubr.f32.mxu0 %v1732_v0  ;;  %1111 = vmatprep.mubr.f32.mxu1 %v1732_v0 }
 0x100   :  { %1657 = vmatmul.mubr.msk.f32.gmra.mxu0 %vm749_vm1, %v1895_v34  ;;  %1661 = vmatmul.mubr.msk.f32.gmra.mxu1 %vm749_vm1, %v1895_v34 }
 0x101   :  { %1182 = vmatprep.mubr.f32.mxu0 %v1732_v0  ;;  %1271 = vmatprep.mubr.f32.mxu1 %v1732_v0 }
 0x104   :  { %1662 = vmatmul.mubr.msk.f32.vlgmr.msra.gmra.mxu0 %vm749_vm1, %v1848_v58  ;;  %1666 = vmatmul.mubr.msk.f32.vlgmr.msra.gmra.mxu1 %vm749_vm1, %v1848_v58 }
 0x105   :  { %1325 = vmatpush1.msra.mxu0 %v717_v26  ;;  %1414 = vmatpush1.msra.mxu1 %v719_v62 }
 0x106   :  { %1326 = vmatprep.subr.mxu0 %v702_v63  ;;  %1415 = vmatprep.subr.mxu1 %v704_v1 }
 0x107   :  { %1327 = vmatpush1.msra.mxu0 %v701_v2  ;;  %1416 = vmatpush1.msra.mxu1 %v703_v3 }
 0x108   :  { %1188 = vmatprep.mubr.f32.mxu0 %v1732_v0  ;;  %1277 = vmatprep.mubr.f32.mxu1 %v1732_v0 }
 0x109   :  { %1663 = vmatmul.mubr.msk.f32.gmra.mxu0 %vm749_vm1, %v1865_v6  ;;  %1667 = vmatmul.mubr.msk.f32.gmra.mxu1 %vm749_vm1, %v1865_v6 }
 0x10a   :  { %1194 = vmatprep.mubr.f32.mxu0 %v1732_v0  ;;  %1283 = vmatprep.mubr.f32.mxu1 %v1732_v0 }
 0x10d   :  { %1664 = vmatmul.mubr.msk.f32.gmra.mxu0 %vm749_vm1, %v1876_v23  ;;  %1668 = vmatmul.mubr.msk.f32.gmra.mxu1 %vm749_vm1, %v1876_v23 }
 0x10e   :  { %1200 = vmatprep.mubr.f32.mxu0 %v1732_v0  ;;  %1289 = vmatprep.mubr.f32.mxu1 %v1732_v0 }
 0x111   :  { %1665 = vmatmul.mubr.msk.f32.gmra.mxu0 %vm749_vm1, %v1895_v34  ;;  %1669 = vmatmul.mubr.msk.f32.gmra.mxu1 %vm749_vm1, %v1895_v34 }
 0x112   :  { %1360 = vmatprep.mubr.f32.mxu0 %v1732_v0  ;;  %1449 = vmatprep.mubr.f32.mxu1 %v1732_v0 }
 0x115   :  { %1670 = vmatmul.mubr.msk.f32.vlgmr.msra.gmra.mxu0 %vm749_vm1, %v1848_v58  ;;  %1674 = vmatmul.mubr.msk.f32.vlgmr.msra.gmra.mxu1 %vm749_vm1, %v1848_v58 }
 0x116   :  { %1366 = vmatprep.mubr.f32.mxu0 %v1732_v0  ;;  %1455 = vmatprep.mubr.f32.mxu1 %v1732_v0 }
 0x119   :  { %1671 = vmatmul.mubr.msk.f32.gmra.mxu0 %vm749_vm1, %v1865_v6  ;;  %1675 = vmatmul.mubr.msk.f32.gmra.mxu1 %vm749_vm1, %v1865_v6 }
 0x11a   :  { %1372 = vmatprep.mubr.f32.mxu0 %v1732_v0  ;;  %1461 = vmatprep.mubr.f32.mxu1 %v1732_v0 }
 0x11d   :  { %1672 = vmatmul.mubr.msk.f32.gmra.mxu0 %vm749_vm1, %v1876_v23  ;;  %1676 = vmatmul.mubr.msk.f32.gmra.mxu1 %vm749_vm1, %v1876_v23 }
 0x11e   :  { %1378 = vmatprep.mubr.f32.mxu0 %v1732_v0  ;;  %1467 = vmatprep.mubr.f32.mxu1 %v1732_v0 }
 0x121   :  { %1673 = vmatmul.mubr.msk.f32.gmra.mxu0 %vm749_vm1, %v1895_v34  ;;  %1677 = vmatmul.mubr.msk.f32.gmra.mxu1 %vm749_vm1, %v1895_v34 }
 0x1a1   :  { %v828_v33 = vpop.f32.mrf.mxu0  ;;  %v917_v58 = vpop.f32.mrf.mxu1 }
 0x1a2   :  { %v829_v14 = vadd.f32 %v828_v33, %v1989_v8  ;;  %v918_v17 = vadd.f32 %v917_v58, %v1989_v8 }
 0x1a3   :  { %v830_v4 = vpop.f32.mrf.mxu0  ;;  %v919_v5 = vpop.f32.mrf.mxu1 }
 0x1a4   :  { %v831_v11 = vadd.f32 %v830_v4, %v1989_v8  ;;  %v1474_v22 = vmax.f32 %v829_v14, 0.0  ;;  %v1476_v28 = vmax.f32 %v918_v17, 0.0  ;;  %v920_v36 = vadd.f32 %v919_v5, %v1989_v8 }
 0x1a5   :  { %v834_v6 = vpop.f32.mrf.mxu0  ;;  %v923_v7 = vpop.f32.mrf.mxu1 }
 0x1a6   :  { %v1475_v18 = vmax.f32 %v831_v11, 0.0  ;;  %v835_v23 = vadd.f32 %v834_v6, %v1992_v13  ;;  %v924_v30 = vadd.f32 %v923_v7, %v1992_v13  ;;  %v1477_v49 = vmax.f32 %v920_v36, 0.0 }
 0x1a7   :  { %v836_v9 = vpop.f32.mrf.mxu0  ;;  %v925_v10 = vpop.f32.mrf.mxu1 }
 0x1a8   :  { %v837_v19 = vadd.f32 %v836_v9, %v1992_v13  ;;  %v1538_v29 = vmax.f32 %v1474_v22, %v1475_v18  ;;  %v1490_v38 = vmax.f32 %v835_v23, 0.0  ;;  %v926_v44 = vadd.f32 %v925_v10, %v1992_v13 }
 0x1a9   :  { %v1492_v45 = vmax.f32 %v924_v30, 0.0 }
 0x1aa   :  { %v1491_v31 = vmax.f32 %v837_v19, 0.0  ;;  %v1542_v42 = vmax.f32 %v1538_v29, %v1476_v28  ;;  %v1493_v60 = vmax.f32 %v926_v44, 0.0 }
 0x1ab   :  { %v840_v12 = vpop.f32.mrf.mxu0  ;;  %v929_v0 = vpop.f32.mrf.mxu1 }
 0x1ac   :  { %v841_v39 = vadd.f32 %v840_v12, %v2000_v27  ;;  %v1539_v46 = vmax.f32 %v1490_v38, %v1491_v31  ;;  %v930_v55 = vadd.f32 %v929_v0, %v2000_v27  ;;  %v1546_v59 = vmax.f32 %v1542_v42, %v1477_v49 }
 0x1ad   :  { %v842_v15 = vpop.f32.mrf.mxu0  ;;  %v931_v16 = vpop.f32.mrf.mxu1 }
 0x1ae   :  { %v843_v32 = vadd.f32 %v842_v15, %v2000_v27  ;;  %v1506_v54 = vmax.f32 %v841_v39, 0.0  ;;  %v1543_v61 = vmax.f32 %v1539_v46, %v1492_v45  ;;  %v1508_v9 = vmax.f32 %v930_v55, 0.0 }
 0x1af   :  { %v846_v20 = vpop.f32.mrf.mxu0  ;;  %v935_v21 = vpop.f32.mrf.mxu1  ;;  %v932_v10 = vadd.f32 %v931_v16, %v2000_v27 }
 0x1b0   :  { %v1507_v47 = vmax.f32 %v843_v32, 0.0  ;;  %v847_v57 = vadd.f32 %v846_v20, %v2007_v43  ;;  %v936_v2 = vadd.f32 %v935_v21, %v2007_v43  ;;  %v1547_v0 = vmax.f32 %v1543_v61, %v1493_v60 }
 0x1b1   :  { %v848_v24 = vpop.f32.mrf.mxu0  ;;  %v1998_v25 = vpop.f32.mrf.mxu1  ;;  %v1509_v30 = vmax.f32 %v932_v10, 0.0 }
 0x1b2   :  { %v849_v48 = vadd.f32 %v848_v24, %v2007_v43  ;;  %v1540_v63 = vmax.f32 %v1506_v54, %v1507_v47  ;;  %v1522_v12 = vmax.f32 %v847_v57, 0.0  ;;  %v1524_v19 = vmax.f32 %v936_v2, 0.0 }
 0x1b3   :  { %v1006_v34 = vpop.f32.mrf.mxu0  ;;  %v1095_v35 = vpop.f32.mrf.mxu1 }
 0x1b4   :  { %v1007_v37 = vadd.f32 %v1006_v34, %v1989_v8  ;;  %v1096_v1 = vadd.f32 %v1095_v35, %v1989_v8  ;;  %v1523_v3 = vmax.f32 %v849_v48, 0.0  ;;  %v1544_v17 = vmax.f32 %v1540_v63, %v1508_v9 }
 0x1b5   :  { %v1008_v40 = vpop.f32.mrf.mxu0  ;;  %v1097_v41 = vpop.f32.mrf.mxu1  ;;  %v938_v34 = vadd.f32 %v1998_v25, %v2007_v43 }
 0x1b6   :  { %v1478_v50 = vmax.f32 %v1007_v37, 0.0  ;;  %v1009_v51 = vadd.f32 %v1008_v40, %v1989_v8  ;;  %v1480_v18 = vmax.f32 %v1096_v1, 0.0  ;;  %v1541_v20 = vmax.f32 %v1522_v12, %v1523_v3 }
 0x1b7   :  { %v1098_v32 = vadd.f32 %v1097_v41, %v1989_v8  ;;  %v1548_v38 = vmax.f32 %v1544_v17, %v1509_v30 }
 0x1b8   :  { %v1012_v52 = vpop.f32.mrf.mxu0  ;;  %v1101_v53 = vpop.f32.mrf.mxu1  ;;  %v1550_v33 = vmax.f32 %v1546_v59, %v1478_v50  ;;  %v1479_v58 = vmax.f32 %v1009_v51, 0.0  ;;  %v1545_v44 = vmax.f32 %v1541_v20, %v1524_v19  ;;  %v1525_v51 = vmax.f32 %v938_v34, 0.0 }
 0x1b9   :  { %v1013_v56 = vadd.f32 %v1012_v52, %v1992_v13  ;;  %v1102_v23 = vadd.f32 %v1101_v53, %v1992_v13  ;;  %v1481_v50 = vmax.f32 %v1098_v32, 0.0 }
 0x1ba   :  { %v1014_v26 = vpop.f32.mrf.mxu0  ;;  %v1103_v62 = vpop.f32.mrf.mxu1  ;;  %v1554_v21 = vmax.f32 %v1550_v33, %v1479_v58  ;;  %v1549_v60 = vmax.f32 %v1545_v44, %v1525_v51 }
 0x1bb   :  { %v1494_v4 = vmax.f32 %v1013_v56, 0.0  ;;  %v1015_v5 = vadd.f32 %v1014_v26, %v1992_v13  ;;  %v1496_v40 = vmax.f32 %v1102_v23, 0.0  ;;  %v1104_v54 = vadd.f32 %v1103_v62, %v1992_v13 }
 0x1bc   :  { %v1018_v6 = vpop.f32.mrf.mxu0  ;;  %v1107_v7 = vpop.f32.mrf.mxu1  ;;  %v1558_v39 = vmax.f32 %v1554_v21, %v1480_v18 }
 0x1bd   :  { %v1019_v11 = vadd.f32 %v1018_v6, %v2000_v27  ;;  %v1551_v22 = vmax.f32 %v1547_v0, %v1494_v4  ;;  %v1495_v24 = vmax.f32 %v1015_v5, 0.0  ;;  %v1108_v55 = vadd.f32 %v1107_v7, %v2000_v27 }
 0x1be   :  { %v1020_v14 = vpop.f32.mrf.mxu0  ;;  %v1109_v15 = vpop.f32.mrf.mxu1  ;;  %v1562_v59 = vmax.f32 %v1558_v39, %v1481_v50  ;;  %v1497_v62 = vmax.f32 %v1104_v54, 0.0 }
 0x1bf   :  { %v1510_v31 = vmax.f32 %v1019_v11, 0.0  ;;  %v1021_v16 = vadd.f32 %v1020_v14, %v2000_v27  ;;  %v1555_v42 = vmax.f32 %v1551_v22, %v1495_v24  ;;  %v1110_v63 = vadd.f32 %v1109_v15, %v2000_v27 }
 0x1c0   :  { %v1024_v28 = vpop.f32.mrf.mxu0  ;;  %v1113_v29 = vpop.f32.mrf.mxu1  ;;  %v1512_v6 = vmax.f32 %v1108_v55, 0.0 }
 0x1c1   :  { %v1025_v35 = vadd.f32 %v1024_v28, %v2007_v43  ;;  %v1552_v47 = vmax.f32 %v1548_v38, %v1510_v31  ;;  %v1511_v48 = vmax.f32 %v1021_v16, 0.0  ;;  %v1559_v61 = vmax.f32 %v1555_v42, %v1496_v40 }
 0x1c2   :  { %v1026_v36 = vpop.f32.mrf.mxu0  ;;  %v1115_v37 = vpop.f32.mrf.mxu1  ;;  %v1114_v7 = vadd.f32 %v1113_v29, %v2007_v43  ;;  %v1513_v19 = vmax.f32 %v1110_v63, 0.0 }
 0x1c3   :  { %v1027_v49 = vadd.f32 %v1026_v36, %v2007_v43  ;;  %v1526_v25 = vmax.f32 %v1025_v35, 0.0  ;;  %v1556_v26 = vmax.f32 %v1552_v47, %v1511_v48  ;;  %v1563_v14 = vmax.f32 %v1559_v61, %v1497_v62 }
 0x1c4   :  { %v1184_v45 = vpop.f32.mrf.mxu0  ;;  %v1273_v46 = vpop.f32.mrf.mxu1  ;;  %v1528_v23 = vmax.f32 %v1114_v7, 0.0  ;;  %v1116_v24 = vadd.f32 %v1115_v37, %v2007_v43 }
 0x1c5   :  { %v1185_v41 = vadd.f32 %v1184_v45, %v1989_v8  ;;  %v1527_v1 = vmax.f32 %v1027_v49, 0.0  ;;  %v1553_v33 = vmax.f32 %v1549_v60, %v1526_v25  ;;  %v1274_v11 = vadd.f32 %v1273_v46, %v1989_v8 }
 0x1c6   :  { %v1186_v52 = vpop.f32.mrf.mxu0  ;;  %v1275_v53 = vpop.f32.mrf.mxu1  ;;  %v1560_v15 = vmax.f32 %v1556_v26, %v1512_v6  ;;  %v1529_v50 = vmax.f32 %v1116_v24, 0.0 }
 0x1c7   :  { %v1482_v56 = vmax.f32 %v1185_v41, 0.0  ;;  %v1187_v57 = vadd.f32 %v1186_v52, %v1989_v8  ;;  %v1557_v20 = vmax.f32 %v1553_v33, %v1527_v1  ;;  %v1484_v16 = vmax.f32 %v1274_v11, 0.0 }
 0x1c8   :  { %v1276_v32 = vadd.f32 %v1275_v53, %v1989_v8  ;;  %v1564_v36 = vmax.f32 %v1560_v15, %v1513_v19 }
 0x1c9   :  { %v1190_v2 = vpop.f32.mrf.mxu0  ;;  %v1279_v3 = vpop.f32.mrf.mxu1  ;;  %v1566_v58 = vmax.f32 %v1562_v59, %v1482_v56  ;;  %v1483_v4 = vmax.f32 %v1187_v57, 0.0  ;;  %v1561_v42 = vmax.f32 %v1557_v20, %v1528_v23 }
 0x1ca   :  { %v1191_v5 = vadd.f32 %v1190_v2, %v1992_v13  ;;  %v1280_v38 = vadd.f32 %v1279_v3, %v1992_v13  ;;  %v1485_v51 = vmax.f32 %v1276_v32, 0.0 }
 0x1cb   :  { %v1192_v9 = vpop.f32.mrf.mxu0  ;;  %v1281_v10 = vpop.f32.mrf.mxu1  ;;  %v1570_v21 = vmax.f32 %v1566_v58, %v1483_v4  ;;  %v1565_v57 = vmax.f32 %v1561_v42, %v1529_v50  ;;  %v1678_v42 = vld [vmem:[%s2071_s1] ss:$0 sm:$0xff]  ;;  %s1734_s1 = smov [#allocation5]  }
 0x1cc   :  { %v1498_v12 = vmax.f32 %v1191_v5, 0.0  ;;  %v1193_v0 = vadd.f32 %v1192_v9, %v1992_v13  ;;  %v1282_v46 = vadd.f32 %v1281_v10, %v1992_v13  ;;  %v1500_v52 = vmax.f32 %v1280_v38, 0.0  ;;  %s1618_s23 = sshll.u32 %s1734_s1, 4  ;;  %s1619_s23 = int_to_ptr.vmem [resolvable:$true] %s1618_s23 }
 0x1cd   :  { %v1196_v17 = vpop.f32.mrf.mxu0  ;;  %v1285_v18 = vpop.f32.mrf.mxu1  ;;  %v1574_v44 = vmax.f32 %v1570_v21, %v1484_v16  ;;  %s1707_s24 = scalar_lea.vmem %s1619_s23, 512  ;;  %p1712_p6 = scmp.lt.s32.totalorder %s1619_s23, %s1619_s23 }
 0x1ce   :  { %v1197_v22 = vadd.f32 %v1196_v17, %v2000_v27  ;;  %v1567_v28 = vmax.f32 %v1563_v14, %v1498_v12  ;;  %v1499_v29 = vmax.f32 %v1193_v0, 0.0  ;;  %v1286_v25 = vadd.f32 %v1285_v18, %v2000_v27  ;;  %p1708_p5 = scmp.ne.s32.totalorder %s1619_s23, %s1707_s24  ;;  %p1713_p7 = scmp.lt.s32.totalorder %s1707_s24, %s1707_s24 }
 0x1cf   :  { %v1198_v30 = vpop.f32.mrf.mxu0  ;;  %v1287_v31 = vpop.f32.mrf.mxu1  ;;  %v1578_v59 = vmax.f32 %v1574_v44, %v1485_v51  ;;  %v1501_v61 = vmax.f32 %v1282_v46, 0.0 }
 0x1d0   :  { %v1514_v34 = vmax.f32 %v1197_v22, 0.0  ;;  %v1199_v35 = vadd.f32 %v1198_v30, %v2000_v27  ;;  %v1571_v37 = vmax.f32 %v1567_v28, %v1499_v29  ;;  %v1288_v1 = vadd.f32 %v1287_v31, %v2000_v27  ;;  %p1714_p8 = por %p1713_p7, %p1712_p6 }
 0x1d1   :  { %v1202_v39 = vpop.f32.mrf.mxu0  ;;  %v1291_v40 = vpop.f32.mrf.mxu1  ;;  %v1516_v33 = vmax.f32 %v1286_v25, 0.0 }
 0x1d2   :  { %v1203_v45 = vadd.f32 %v1202_v39, %v2007_v43  ;;  %v1568_v47 = vmax.f32 %v1564_v36, %v1514_v34  ;;  %v1515_v48 = vmax.f32 %v1199_v35, 0.0  ;;  %v1575_v26 = vmax.f32 %v1571_v37, %v1500_v52  ;;  %p1715_p9 = pnand %p1714_p8, %p1708_p5 }
 0x1d3   :  { %v1204_v49 = vpop.f32.mrf.mxu0  ;;  %v1293_v41 = vpop.f32.mrf.mxu1  ;;  %v1292_v6 = vadd.f32 %v1291_v40, %v2007_v43  ;;  %v1517_v17 = vmax.f32 %v1288_v1, 0.0 }
 0x1d4   :  { %v1530_v53 = vmax.f32 %v1203_v45, 0.0  ;;  %v1205_v54 = vadd.f32 %v1204_v49, %v2007_v43  ;;  %v1572_v63 = vmax.f32 %v1568_v47, %v1515_v48  ;;  %v1579_v15 = vmax.f32 %v1575_v26, %v1501_v61 }
 0x1d5   :  { %v1362_v55 = vpop.f32.mrf.mxu0  ;;  %v1451_v56 = vpop.f32.mrf.mxu1  ;;  %v1532_v29 = vmax.f32 %v1292_v6, 0.0  ;;  %v1294_v40 = vadd.f32 %v1293_v41, %v2007_v43 }
 0x1d6   :  { %v1363_v60 = vadd.f32 %v1362_v55, %v1989_v8  ;;  %v1452_v4 = vadd.f32 %v1451_v56, %v1989_v8  ;;  %v1569_v62 = vmax.f32 %v1565_v57, %v1530_v53  ;;  %v1531_v7 = vmax.f32 %v1205_v54, 0.0 }
 0x1d7   :  { %v1364_v2 = vpop.f32.mrf.mxu0  ;;  %v1453_v3 = vpop.f32.mrf.mxu1  ;;  %v1576_v18 = vmax.f32 %v1572_v63, %v1516_v33  ;;  %v1533_v57 = vmax.f32 %v1294_v40, 0.0 }
 0x1d8   :  { %v1486_v58 = vmax.f32 %v1363_v60, 0.0  ;;  %v1365_v5 = vadd.f32 %v1364_v2, %v1989_v8  ;;  %v1454_v9 = vadd.f32 %v1453_v3, %v1989_v8  ;;  %v1488_v22 = vmax.f32 %v1452_v4, 0.0 }
 0x1d9   :  { %v1368_v10 = vpop.f32.mrf.mxu0  ;;  %v1457_v11 = vpop.f32.mrf.mxu1  ;;  %v1573_v8 = vmax.f32 %v1569_v62, %v1531_v7  ;;  %v1580_v39 = vmax.f32 %v1576_v18, %v1517_v17 }
 0x1da   :  { %v1582_v12 = vmax.f32 %v1578_v59, %v1486_v58  ;;  %v1487_v0 = vmax.f32 %v1365_v5, 0.0  ;;  %v1369_v14 = vadd.f32 %v1368_v10, %v1992_v13  ;;  %v1458_v19 = vadd.f32 %v1457_v11, %v1992_v13 }
 0x1db   :  { %v1370_v20 = vpop.f32.mrf.mxu0  ;;  %v1459_v21 = vpop.f32.mrf.mxu1  ;;  %v1489_v30 = vmax.f32 %v1454_v9, 0.0  ;;  %v1577_v50 = vmax.f32 %v1573_v8, %v1532_v29 }
 0x1dc   :  { %v1586_v23 = vmax.f32 %v1582_v12, %v1487_v0  ;;  %v1502_v24 = vmax.f32 %v1369_v14, 0.0  ;;  %v1371_v28 = vadd.f32 %v1370_v20, %v1992_v13  ;;  %v1460_v31 = vadd.f32 %v1459_v21, %v1992_v13 }
 0x1dd   :  { %v1374_v16 = vpop.f32.mrf.mxu0  ;;  %v1463_v32 = vpop.f32.mrf.mxu1  ;;  %v1504_v44 = vmax.f32 %v1458_v19, 0.0  ;;  %v1581_v3 = vmax.f32 %v1577_v50, %v1533_v57 }
 0x1de   :  { %v1590_v34 = vmax.f32 %v1586_v23, %v1488_v22  ;;  %v1583_v35 = vmax.f32 %v1579_v15, %v1502_v24  ;;  %v1503_v36 = vmax.f32 %v1371_v28, 0.0  ;;  %v1375_v38 = vadd.f32 %v1374_v16, %v2000_v27 }
 0x1df   :  { %v1464_v45 = vadd.f32 %v1463_v32, %v2000_v27  ;;  %v1376_v37 = vpop.f32.mrf.mxu0  ;;  %v1465_v46 = vpop.f32.mrf.mxu1  ;;  %v1505_v51 = vmax.f32 %v1460_v31, 0.0 }
 0x1e0   :  { %v1594_v13 = vmax.f32 %v1590_v34, %v1489_v30  ;;  %v1587_v47 = vmax.f32 %v1583_v35, %v1503_v36  ;;  %v1518_v48 = vmax.f32 %v1375_v38, 0.0  ;;  %v1377_v49 = vadd.f32 %v1376_v37, %v2000_v27 }
 0x1e1   :  { %v1466_v25 = vadd.f32 %v1465_v46, %v2000_v27  ;;  %v1380_v52 = vpop.f32.mrf.mxu0  ;;  %v1469_v41 = vpop.f32.mrf.mxu1  ;;  %v1520_v26 = vmax.f32 %v1464_v45, 0.0 }
 0x1e2   :  { %v1605_v53 = vmul.f32 %v1678_v42, %v1594_v13  ;;  %v1591_v54 = vmax.f32 %v1587_v47, %v1504_v44  ;;  %v1584_v55 = vmax.f32 %v1580_v39, %v1518_v48  ;;  %v1519_v56 = vmax.f32 %v1377_v49, 0.0 }
 0x1e3   :  { %v1381_v59 = vadd.f32 %v1380_v52, %v2007_v43  ;;  %v1382_v60 = vpop.f32.mrf.mxu0  ;;  %v1471_v2 = vpop.f32.mrf.mxu1  ;;  %v1470_v27 = vadd.f32 %v1469_v41, %v2007_v43  ;;  %v1521_v4 = vmax.f32 %v1466_v25, 0.0 }
 0x1e4   :  { %1609 = vst [vmem:[#allocation5] sm:$0xff] %v1605_v53  ;;  %v1595_v61 = vmax.f32 %v1591_v54, %v1505_v51  ;;  %v1588_v63 = vmax.f32 %v1584_v55, %v1519_v56  ;;  %v1383_v1 = vadd.f32 %v1382_v60, %v2007_v43  ;;  %v1472_v7 = vadd.f32 %v1471_v2, %v2007_v43 }
 0x1e5   :  { %v1534_v33 = vmax.f32 %v1381_v59, 0.0  ;;  %v1536_v10 = vmax.f32 %v1470_v27, 0.0 }
 0x1e6   :  { %v1606_v58 = vmul.f32 %v1678_v42, %v1595_v61  ;;  %v1592_v5 = vmax.f32 %v1588_v63, %v1520_v26  ;;  %v1535_v62 = vmax.f32 %v1383_v1, 0.0  ;;  %v1537_v0 = vmax.f32 %v1472_v7, 0.0 }
 0x1e7   :  { %v1585_v6 = vmax.f32 %v1581_v3, %v1534_v33 }
 0x1e8   :  { %1610 = vst [vmem:[#allocation5 + $0x8] sm:$0xff] %v1606_v58  ;;  %v1596_v9 = vmax.f32 %v1592_v5, %v1521_v4 }
 0x1e9   :  { %v1589_v11 = vmax.f32 %v1585_v6, %v1535_v62 }
 0x1ea   :  { %v1607_v12 = vmul.f32 %v1678_v42, %v1596_v9 }
 0x1eb   :  { %v1593_v14 = vmax.f32 %v1589_v11, %v1536_v10 }
 0x1ec   :  { %1611 = vst [vmem:[#allocation5 + $0x10] sm:$0xff] %v1607_v12 }
 0x1ed   :  { %v1597_v15 = vmax.f32 %v1593_v14, %v1537_v0 }
 0x1ef   :  { %v1608_v17 = vmul.f32 %v1678_v42, %v1597_v15 }
 0x1f1   :  { %1612 = vst [vmem:[#allocation5 + $0x18] sm:$0xff] %v1608_v17 }
 0x1f2   :  { %1718 = shalt.err (!%p1715_p9)
}
 0x1f3   :  { %s1735_s25 = smov 128   ;;  %s1736_s26 = smov 8  }
 0x1f4   :  { %1624 = dma.vmem_to_hbm [thread:$0]  %s1619_s23, 512, %s2076_s6, [#allocation4], %s1735_s25, %s1735_s25, %s1736_s26  }
 0x1f5   :  { %1729 = dma.done.wait [#allocation4], 512  }
 0x1f6   :  { %1730 = vsyncadd [#allocation4], 4294966784 }
 0x1f7   :  { %1628 = vsyncpa [#allocation3], 1 }
 0x1f8   :  { %1629 = vsyncpa [#allocation4], 1 }

</bundles_post_ra>
